<compile_context>
chip_gen: v7x
topology: tpu7x:2x2x1
jax: 0.10.0
libtpu: 0.0.40
codegen_flags: <defaults>
</compile_context>

<pallas_src>
import functools

import jax
import jax.numpy as jnp
from jax.experimental import pallas as pl
from jax.experimental.pallas import tpu as pltpu


def _mfcritic_kernel(obs_ref, gov_ref, act_ref, ms_ref, ma_ref,
                     w_fc1, b_fc1, w_gov, b_gov, w_house, b_house, w_mact, b_mact,
                     w_q1, b_q1, w_q2, b_q2, w_q, b_q,
                     out_ref, *, compute_dtype, h1_dim):
    """One batch tile. Inputs/weights are compute_dtype; biases/accumulation are f32."""

    def dot(a, w):
        return jnp.dot(a, w, preferred_element_type=jnp.float32)

    w_q1_full = w_q1[...]  # (5*h1_dim, hidden), already compute_dtype

    # Embedding branches. NOTE: the PyTorch forward routes BOTH mean_state and
    # mean_action through mean_action_emb, so w_mact/b_mact appear twice.
    branches = ((obs_ref, w_fc1, b_fc1),
                (gov_ref, w_gov, b_gov),
                (act_ref, w_house, b_house),
                (ms_ref, w_mact, b_mact),
                (ma_ref, w_mact, b_mact))

    acc = None
    for i, (x_r, w_r, b_r) in enumerate(branches):
        e = jnp.maximum(dot(x_r[...], w_r[...]) + b_r[...], 0.0)          # (TB, h1) f32
        part = dot(e.astype(compute_dtype),
                   w_q1_full[i * h1_dim:(i + 1) * h1_dim, :])             # (TB, hidden)
        acc = part if acc is None else acc + part

    h1 = jnp.maximum(acc + b_q1[...], 0.0)
    h2 = jnp.maximum(dot(h1.astype(compute_dtype), w_q2[...]) + b_q2[...], 0.0)
    q = dot(h2.astype(compute_dtype), w_q[...]) + b_q[...]                # (TB, 1)
    out_ref[...] = q.astype(out_ref.dtype)


def _round_up(x, m):
    return ((x + m - 1) // m) * m


def mfcritic_forward(obs, gov_action, action, mean_state, mean_action, params,
                     *, compute_dtype=jnp.float32, batch_tile=2048):
    """MFCritic forward pass as one batch-tiled Pallas kernel. Returns (B, 1) float32."""
    B = obs.shape[0]

    # The PyTorch forward applies mean_action_emb to mean_state as well, so the dims
    # must match; fail early with a clear message otherwise.
    mact_in_dim = params["mean_action_emb"][0].shape[0]
    assert mean_state.shape[-1] == mact_in_dim, (
        "mean_state_dim must equal mean_action_dim: the original module feeds "
        "mean_state through mean_action_emb.")

    cd = compute_dtype
    h1_dim = params["fc1"][0].shape[1]
    hidden = params["q_value_fc1"][0].shape[1]

    # Inputs: cast to compute_dtype in the wrapper so the HBM read is already narrow.
    xs = [a.astype(cd) for a in (obs, gov_action, action, mean_state, mean_action)]
    dims = [a.shape[1] for a in xs]

    # Weights (matmul operands) in compute_dtype; biases stay f32.
    def wb(name):
        w, b = params[name]
        return w.astype(cd), b.reshape(1, -1).astype(jnp.float32)

    w_fc1, b_fc1 = wb("fc1")
    w_gov, b_gov = wb("gov_action_emb")
    w_house, b_house = wb("house_action_emb")
    w_mact, b_mact = wb("mean_action_emb")
    w_q1, b_q1 = wb("q_value_fc1")
    w_q2, b_q2 = wb("q_value_fc2")
    w_q, b_q = wb("q_value")
    weights = (w_fc1, b_fc1, w_gov, b_gov, w_house, b_house, w_mact, b_mact,
               w_q1, b_q1, w_q2, b_q2, w_q, b_q)

    # Batch tile: multiple of 8 sublanes; for non-trivial batches keep >= 2 grid steps
    # so ("parallel",) can shard the batch axis across v7x's two TensorCores.
    TB = min(batch_tile, max(8, _round_up((B + 1) // 2, 8)))
    B_pad = _round_up(max(B, TB), TB)
    if B_pad != B:
        xs = [jnp.pad(a, ((0, B_pad - B), (0, 0))) for a in xs]

    grid = (B_pad // TB,)

    in_specs = [pl.BlockSpec((TB, d), lambda i: (i, 0)) for d in dims]
    # Weights/biases: full-array blocks, VMEM-resident across all grid steps.
    in_specs += [pl.BlockSpec(p.shape, lambda i: (0, 0)) for p in weights]
    out_spec = pl.BlockSpec((TB, 1), lambda i: (i, 0))

    in_bytes = sum(d * jnp.dtype(cd).itemsize for d in dims)
    flops_per_row = 2 * (sum(dims) * h1_dim + 5 * h1_dim * hidden
                         + hidden * hidden + hidden)
    cost = pl.CostEstimate(
        flops=B_pad * flops_per_row,
        transcendentals=0,
        bytes_accessed=B_pad * (in_bytes + 4) + sum(int(p.size) * p.dtype.itemsize
                                                    for p in weights))

    out = pl.pallas_call(
        functools.partial(_mfcritic_kernel, compute_dtype=cd, h1_dim=h1_dim),
        out_shape=jax.ShapeDtypeStruct((B_pad, 1), jnp.float32),
        grid=grid,
        in_specs=in_specs,
        out_specs=out_spec,
        cost_estimate=cost,
        compiler_params=pltpu.CompilerParams(
            dimension_semantics=("parallel",)),
    )(*xs, *weights)

    return out[:B]


def _init_linear(key, in_dim, out_dim):
    """Deterministic init mimicking PyTorch nn.Linear default (kaiming uniform).

    Weight is returned pre-transposed as (in_dim, out_dim); bias as (out_dim,).
    """
    kw, kb = jax.random.split(key)
    bound = 1.0 / jnp.sqrt(jnp.float32(in_dim))
    w = jax.random.uniform(kw, (in_dim, out_dim), jnp.float32, -bound, bound)
    b = jax.random.uniform(kb, (out_dim,), jnp.float32, -bound, bound)
    return w, b


def make_params(key, obs_dims, gov_action_dim, action_dim, mean_state_dim,
                mean_action_dim, hidden_size, hidden_size_1=64):
    keys = jax.random.split(key, 8)
    return {
        "fc1": _init_linear(keys[0], obs_dims, hidden_size_1),
        "gov_action_emb": _init_linear(keys[1], gov_action_dim, hidden_size_1),
        "house_action_emb": _init_linear(keys[2], action_dim, hidden_size_1),
        "mean_action_emb": _init_linear(keys[3], mean_action_dim, hidden_size_1),
        # mean_state_emb exists in __init__ but is unused in forward; kept for parity.
        "mean_state_emb": _init_linear(keys[4], mean_state_dim, hidden_size_1),
        "q_value_fc1": _init_linear(keys[5], hidden_size_1 * 5, hidden_size),
        "q_value_fc2": _init_linear(keys[6], hidden_size, hidden_size),
        "q_value": _init_linear(keys[7], hidden_size, 1),
    }


def _reference_forward(obs, gov_action, action, mean_state, mean_action, params):
    """Pure-JAX reference replicating the PyTorch forward exactly."""
    def lin(x, p):
        w, b = p
        return x @ w + b

    relu = lambda v: jnp.maximum(v, 0.0)
    obs_emb = relu(lin(obs, params["fc1"]))
    gov_emb = relu(lin(gov_action, params["gov_action_emb"]))
    act_emb = relu(lin(action, params["house_action_emb"]))
    mstate_emb = relu(lin(mean_state, params["mean_action_emb"]))   # matches PyTorch code
    mact_emb = relu(lin(mean_action, params["mean_action_emb"]))
    cat = jnp.concatenate([obs_emb, gov_emb, act_emb, mstate_emb, mact_emb], axis=-1)
    emb = relu(lin(cat, params["q_value_fc1"]))
    emb = relu(lin(emb, params["q_value_fc2"]))
    return lin(emb, params["q_value"])


if __name__ == "__main__":
    obs_dims = 16
    gov_action_dim = 5
    action_dim = 3
    mean_state_dim = 6
    mean_action_dim = 6   # must equal mean_state_dim (same constraint as the PyTorch code)
    hidden_size = 32
    hidden_size_1 = 64

    key = jax.random.PRNGKey(0)
    kp, k1, k2, k3, k4, k5 = jax.random.split(key, 6)
    params = make_params(kp, obs_dims, gov_action_dim, action_dim,
                         mean_state_dim, mean_action_dim, hidden_size, hidden_size_1)

    def make_inputs(batch):
        a, b, c, d, e = (jax.random.fold_in(k1, batch), jax.random.fold_in(k2, batch),
                         jax.random.fold_in(k3, batch), jax.random.fold_in(k4, batch),
                         jax.random.fold_in(k5, batch))
        return (jax.random.normal(a, (batch, obs_dims), jnp.float32),
                jax.random.normal(b, (batch, gov_action_dim), jnp.float32),
                jax.random.normal(c, (batch, action_dim), jnp.float32),
                jax.random.normal(d, (batch, mean_state_dim), jnp.float32),
                jax.random.normal(e, (batch, mean_action_dim), jnp.float32))

    # --- Small batch (single grid step), f32, strict check. ---
    B = 8
    inputs = make_inputs(B)
    out = jax.block_until_ready(mfcritic_forward(*inputs, params))
    ref = _reference_forward(*inputs, params)
    assert out.shape == (B, 1)
    assert jnp.allclose(out, ref, atol=1e-5, rtol=1e-5), "Pallas kernel mismatch (B=8, f32)"

    # --- Non-multiple-of-tile batch (padding + grid of 2 parallel steps), f32. ---
    B2 = 200
    inputs2 = make_inputs(B2)
    out2 = jax.block_until_ready(mfcritic_forward(*inputs2, params))
    ref2 = _reference_forward(*inputs2, params)
    assert out2.shape == (B2, 1)
    assert jnp.allclose(out2, ref2, atol=1e-4, rtol=1e-4), "Pallas kernel mismatch (B=200, f32)"

    # --- bf16 matmul-operand path (halves input HBM traffic); loose-tolerance check. ---
    out_bf16 = jax.block_until_ready(
        mfcritic_forward(*inputs2, params, compute_dtype=jnp.bfloat16))
    assert out_bf16.shape == (B2, 1)
    assert bool(jnp.all(jnp.isfinite(out_bf16)))
    assert jnp.allclose(out_bf16, ref2, atol=5e-2, rtol=5e-2), "bf16 path too far from f32 ref"

    print("KERNEL_OK")
</pallas_src>

<mosaic_0001>
module attributes {stable_mosaic.version = 11 : i64} {
  func.func @_mfcritic_kernel(%arg0: i32, %arg1: memref<8x16xf32, #tpu.memory_space<vmem>>, %arg2: memref<8x5xf32, #tpu.memory_space<vmem>>, %arg3: memref<8x3xf32, #tpu.memory_space<vmem>>, %arg4: memref<8x6xf32, #tpu.memory_space<vmem>>, %arg5: memref<8x6xf32, #tpu.memory_space<vmem>>, %arg6: memref<16x64xf32, #tpu.memory_space<vmem>>, %arg7: memref<1x64xf32, #tpu.memory_space<vmem>>, %arg8: memref<5x64xf32, #tpu.memory_space<vmem>>, %arg9: memref<1x64xf32, #tpu.memory_space<vmem>>, %arg10: memref<3x64xf32, #tpu.memory_space<vmem>>, %arg11: memref<1x64xf32, #tpu.memory_space<vmem>>, %arg12: memref<6x64xf32, #tpu.memory_space<vmem>>, %arg13: memref<1x64xf32, #tpu.memory_space<vmem>>, %arg14: memref<320x32xf32, #tpu.memory_space<vmem>>, %arg15: memref<1x32xf32, #tpu.memory_space<vmem>>, %arg16: memref<32x32xf32, #tpu.memory_space<vmem>>, %arg17: memref<1x32xf32, #tpu.memory_space<vmem>>, %arg18: memref<32x1xf32, #tpu.memory_space<vmem>>, %arg19: memref<1x1xf32, #tpu.memory_space<vmem>>, %arg20: memref<8x1xf32, #tpu.memory_space<vmem>>) attributes {dimension_semantics = [#tpu.dimension_semantics<parallel>], iteration_bounds = array<i64: 1>, scalar_prefetch = 0 : i64, scratch_operands = 0 : i64, tpu.core_type = #tpu.core_type<tc>, window_params = [{transform_indices = @transform_0, window_bounds = array<i64: 8, 16>}, {transform_indices = @transform_1, window_bounds = array<i64: 8, 5>}, {transform_indices = @transform_2, window_bounds = array<i64: 8, 3>}, {transform_indices = @transform_3, window_bounds = array<i64: 8, 6>}, {transform_indices = @transform_4, window_bounds = array<i64: 8, 6>}, {pipeline_mode = #tpu.pipeline_mode<synchronous>, transform_indices = @transform_5, window_bounds = array<i64: 16, 64>}, {pipeline_mode = #tpu.pipeline_mode<synchronous>, transform_indices = @transform_6, window_bounds = array<i64: 1, 64>}, {pipeline_mode = #tpu.pipeline_mode<synchronous>, transform_indices = @transform_7, window_bounds = array<i64: 5, 64>}, {pipeline_mode = #tpu.pipeline_mode<synchronous>, transform_indices = @transform_8, window_bounds = array<i64: 1, 64>}, {pipeline_mode = #tpu.pipeline_mode<synchronous>, transform_indices = @transform_9, window_bounds = array<i64: 3, 64>}, {pipeline_mode = #tpu.pipeline_mode<synchronous>, transform_indices = @transform_10, window_bounds = array<i64: 1, 64>}, {pipeline_mode = #tpu.pipeline_mode<synchronous>, transform_indices = @transform_11, window_bounds = array<i64: 6, 64>}, {pipeline_mode = #tpu.pipeline_mode<synchronous>, transform_indices = @transform_12, window_bounds = array<i64: 1, 64>}, {pipeline_mode = #tpu.pipeline_mode<synchronous>, transform_indices = @transform_13, window_bounds = array<i64: 320, 32>}, {pipeline_mode = #tpu.pipeline_mode<synchronous>, transform_indices = @transform_14, window_bounds = array<i64: 1, 32>}, {pipeline_mode = #tpu.pipeline_mode<synchronous>, transform_indices = @transform_15, window_bounds = array<i64: 32, 32>}, {pipeline_mode = #tpu.pipeline_mode<synchronous>, transform_indices = @transform_16, window_bounds = array<i64: 1, 32>}, {pipeline_mode = #tpu.pipeline_mode<synchronous>, transform_indices = @transform_17, window_bounds = array<i64: 32, 1>}, {pipeline_mode = #tpu.pipeline_mode<synchronous>, transform_indices = @transform_18, window_bounds = array<i64: 1, 1>}, {transform_indices = @transform_19, window_bounds = array<i64: 8, 1>}]} {
    %c0 = arith.constant 0 : index
    %c0_0 = arith.constant 0 : index
    %0 = vector.load %arg14[%c0, %c0_0] : memref<320x32xf32, #tpu.memory_space<vmem>>, vector<320x32xf32>
    %c0_1 = arith.constant 0 : index
    %c0_2 = arith.constant 0 : index
    %1 = vector.load %arg1[%c0_1, %c0_2] : memref<8x16xf32, #tpu.memory_space<vmem>>, vector<8x16xf32>
    %c0_3 = arith.constant 0 : index
    %c0_4 = arith.constant 0 : index
    %2 = vector.load %arg6[%c0_3, %c0_4] : memref<16x64xf32, #tpu.memory_space<vmem>>, vector<16x64xf32>
    %cst = arith.constant dense<0.000000e+00> : vector<8x64xf32>
    %3 = tpu.matmul %1, %2, %cst {dimension_numbers = #tpu.dot_dimension_numbers<[1], [0], [0], [1], [0, 0, 1, 1], [], []>} : vector<8x16xf32>, vector<16x64xf32>, vector<8x64xf32> -> vector<8x64xf32>
    %c0_5 = arith.constant 0 : index
    %c0_6 = arith.constant 0 : index
    %4 = vector.load %arg7[%c0_5, %c0_6] : memref<1x64xf32, #tpu.memory_space<vmem>>, vector<1x64xf32>
    %5 = vector.broadcast %4 : vector<1x64xf32> to vector<8x64xf32>
    %6 = arith.addf %3, %5 : vector<8x64xf32>
    %cst_7 = arith.constant 0.000000e+00 : f32
    %7 = vector.broadcast %cst_7 : f32 to vector<8x64xf32>
    %8 = arith.maximumf %6, %7 : vector<8x64xf32>
    %9 = vector.extract_strided_slice %0 {offsets = [0, 0], sizes = [64, 32], strides = [1, 1]} : vector<320x32xf32> to vector<64x32xf32>
    %cst_8 = arith.constant dense<0.000000e+00> : vector<8x32xf32>
    %10 = tpu.matmul %8, %9, %cst_8 {dimension_numbers = #tpu.dot_dimension_numbers<[1], [0], [0], [1], [0, 0, 1, 1], [], []>} : vector<8x64xf32>, vector<64x32xf32>, vector<8x32xf32> -> vector<8x32xf32>
    %c0_9 = arith.constant 0 : index
    %c0_10 = arith.constant 0 : index
    %11 = vector.load %arg2[%c0_9, %c0_10] : memref<8x5xf32, #tpu.memory_space<vmem>>, vector<8x5xf32>
    %c0_11 = arith.constant 0 : index
    %c0_12 = arith.constant 0 : index
    %12 = vector.load %arg8[%c0_11, %c0_12] : memref<5x64xf32, #tpu.memory_space<vmem>>, vector<5x64xf32>
    %cst_13 = arith.constant dense<0.000000e+00> : vector<8x64xf32>
    %13 = tpu.matmul %11, %12, %cst_13 {dimension_numbers = #tpu.dot_dimension_numbers<[1], [0], [0], [1], [0, 0, 1, 1], [], []>} : vector<8x5xf32>, vector<5x64xf32>, vector<8x64xf32> -> vector<8x64xf32>
    %c0_14 = arith.constant 0 : index
    %c0_15 = arith.constant 0 : index
    %14 = vector.load %arg9[%c0_14, %c0_15] : memref<1x64xf32, #tpu.memory_space<vmem>>, vector<1x64xf32>
    %15 = vector.broadcast %14 : vector<1x64xf32> to vector<8x64xf32>
    %16 = arith.addf %13, %15 : vector<8x64xf32>
    %cst_16 = arith.constant 0.000000e+00 : f32
    %17 = vector.broadcast %cst_16 : f32 to vector<8x64xf32>
    %18 = arith.maximumf %16, %17 : vector<8x64xf32>
    %19 = vector.extract_strided_slice %0 {offsets = [64, 0], sizes = [64, 32], strides = [1, 1]} : vector<320x32xf32> to vector<64x32xf32>
    %cst_17 = arith.constant dense<0.000000e+00> : vector<8x32xf32>
    %20 = tpu.matmul %18, %19, %cst_17 {dimension_numbers = #tpu.dot_dimension_numbers<[1], [0], [0], [1], [0, 0, 1, 1], [], []>} : vector<8x64xf32>, vector<64x32xf32>, vector<8x32xf32> -> vector<8x32xf32>
    %21 = arith.addf %10, %20 : vector<8x32xf32>
    %c0_18 = arith.constant 0 : index
    %c0_19 = arith.constant 0 : index
    %22 = vector.load %arg3[%c0_18, %c0_19] : memref<8x3xf32, #tpu.memory_space<vmem>>, vector<8x3xf32>
    %c0_20 = arith.constant 0 : index
    %c0_21 = arith.constant 0 : index
    %23 = vector.load %arg10[%c0_20, %c0_21] : memref<3x64xf32, #tpu.memory_space<vmem>>, vector<3x64xf32>
    %cst_22 = arith.constant dense<0.000000e+00> : vector<8x64xf32>
    %24 = tpu.matmul %22, %23, %cst_22 {dimension_numbers = #tpu.dot_dimension_numbers<[1], [0], [0], [1], [0, 0, 1, 1], [], []>} : vector<8x3xf32>, vector<3x64xf32>, vector<8x64xf32> -> vector<8x64xf32>
    %c0_23 = arith.constant 0 : index
    %c0_24 = arith.constant 0 : index
    %25 = vector.load %arg11[%c0_23, %c0_24] : memref<1x64xf32, #tpu.memory_space<vmem>>, vector<1x64xf32>
    %26 = vector.broadcast %25 : vector<1x64xf32> to vector<8x64xf32>
    %27 = arith.addf %24, %26 : vector<8x64xf32>
    %cst_25 = arith.constant 0.000000e+00 : f32
    %28 = vector.broadcast %cst_25 : f32 to vector<8x64xf32>
    %29 = arith.maximumf %27, %28 : vector<8x64xf32>
    %30 = vector.extract_strided_slice %0 {offsets = [128, 0], sizes = [64, 32], strides = [1, 1]} : vector<320x32xf32> to vector<64x32xf32>
    %cst_26 = arith.constant dense<0.000000e+00> : vector<8x32xf32>
    %31 = tpu.matmul %29, %30, %cst_26 {dimension_numbers = #tpu.dot_dimension_numbers<[1], [0], [0], [1], [0, 0, 1, 1], [], []>} : vector<8x64xf32>, vector<64x32xf32>, vector<8x32xf32> -> vector<8x32xf32>
    %32 = arith.addf %21, %31 : vector<8x32xf32>
    %c0_27 = arith.constant 0 : index
    %c0_28 = arith.constant 0 : index
    %33 = vector.load %arg4[%c0_27, %c0_28] : memref<8x6xf32, #tpu.memory_space<vmem>>, vector<8x6xf32>
    %c0_29 = arith.constant 0 : index
    %c0_30 = arith.constant 0 : index
    %34 = vector.load %arg12[%c0_29, %c0_30] : memref<6x64xf32, #tpu.memory_space<vmem>>, vector<6x64xf32>
    %cst_31 = arith.constant dense<0.000000e+00> : vector<8x64xf32>
    %35 = tpu.matmul %33, %34, %cst_31 {dimension_numbers = #tpu.dot_dimension_numbers<[1], [0], [0], [1], [0, 0, 1, 1], [], []>} : vector<8x6xf32>, vector<6x64xf32>, vector<8x64xf32> -> vector<8x64xf32>
    %c0_32 = arith.constant 0 : index
    %c0_33 = arith.constant 0 : index
    %36 = vector.load %arg13[%c0_32, %c0_33] : memref<1x64xf32, #tpu.memory_space<vmem>>, vector<1x64xf32>
    %37 = vector.broadcast %36 : vector<1x64xf32> to vector<8x64xf32>
    %38 = arith.addf %35, %37 : vector<8x64xf32>
    %cst_34 = arith.constant 0.000000e+00 : f32
    %39 = vector.broadcast %cst_34 : f32 to vector<8x64xf32>
    %40 = arith.maximumf %38, %39 : vector<8x64xf32>
    %41 = vector.extract_strided_slice %0 {offsets = [192, 0], sizes = [64, 32], strides = [1, 1]} : vector<320x32xf32> to vector<64x32xf32>
    %cst_35 = arith.constant dense<0.000000e+00> : vector<8x32xf32>
    %42 = tpu.matmul %40, %41, %cst_35 {dimension_numbers = #tpu.dot_dimension_numbers<[1], [0], [0], [1], [0, 0, 1, 1], [], []>} : vector<8x64xf32>, vector<64x32xf32>, vector<8x32xf32> -> vector<8x32xf32>
    %43 = arith.addf %32, %42 : vector<8x32xf32>
    %c0_36 = arith.constant 0 : index
    %c0_37 = arith.constant 0 : index
    %44 = vector.load %arg5[%c0_36, %c0_37] : memref<8x6xf32, #tpu.memory_space<vmem>>, vector<8x6xf32>
    %c0_38 = arith.constant 0 : index
    %c0_39 = arith.constant 0 : index
    %45 = vector.load %arg12[%c0_38, %c0_39] : memref<6x64xf32, #tpu.memory_space<vmem>>, vector<6x64xf32>
    %cst_40 = arith.constant dense<0.000000e+00> : vector<8x64xf32>
    %46 = tpu.matmul %44, %45, %cst_40 {dimension_numbers = #tpu.dot_dimension_numbers<[1], [0], [0], [1], [0, 0, 1, 1], [], []>} : vector<8x6xf32>, vector<6x64xf32>, vector<8x64xf32> -> vector<8x64xf32>
    %c0_41 = arith.constant 0 : index
    %c0_42 = arith.constant 0 : index
    %47 = vector.load %arg13[%c0_41, %c0_42] : memref<1x64xf32, #tpu.memory_space<vmem>>, vector<1x64xf32>
    %48 = vector.broadcast %47 : vector<1x64xf32> to vector<8x64xf32>
    %49 = arith.addf %46, %48 : vector<8x64xf32>
    %cst_43 = arith.constant 0.000000e+00 : f32
    %50 = vector.broadcast %cst_43 : f32 to vector<8x64xf32>
    %51 = arith.maximumf %49, %50 : vector<8x64xf32>
    %52 = vector.extract_strided_slice %0 {offsets = [256, 0], sizes = [64, 32], strides = [1, 1]} : vector<320x32xf32> to vector<64x32xf32>
    %cst_44 = arith.constant dense<0.000000e+00> : vector<8x32xf32>
    %53 = tpu.matmul %51, %52, %cst_44 {dimension_numbers = #tpu.dot_dimension_numbers<[1], [0], [0], [1], [0, 0, 1, 1], [], []>} : vector<8x64xf32>, vector<64x32xf32>, vector<8x32xf32> -> vector<8x32xf32>
    %54 = arith.addf %43, %53 : vector<8x32xf32>
    %c0_45 = arith.constant 0 : index
    %c0_46 = arith.constant 0 : index
    %55 = vector.load %arg15[%c0_45, %c0_46] : memref<1x32xf32, #tpu.memory_space<vmem>>, vector<1x32xf32>
    %56 = vector.broadcast %55 : vector<1x32xf32> to vector<8x32xf32>
    %57 = arith.addf %54, %56 : vector<8x32xf32>
    %cst_47 = arith.constant 0.000000e+00 : f32
    %58 = vector.broadcast %cst_47 : f32 to vector<8x32xf32>
    %59 = arith.maximumf %57, %58 : vector<8x32xf32>
    %c0_48 = arith.constant 0 : index
    %c0_49 = arith.constant 0 : index
    %60 = vector.load %arg16[%c0_48, %c0_49] : memref<32x32xf32, #tpu.memory_space<vmem>>, vector<32x32xf32>
    %cst_50 = arith.constant dense<0.000000e+00> : vector<8x32xf32>
    %61 = tpu.matmul %59, %60, %cst_50 {dimension_numbers = #tpu.dot_dimension_numbers<[1], [0], [0], [1], [0, 0, 1, 1], [], []>} : vector<8x32xf32>, vector<32x32xf32>, vector<8x32xf32> -> vector<8x32xf32>
    %c0_51 = arith.constant 0 : index
    %c0_52 = arith.constant 0 : index
    %62 = vector.load %arg17[%c0_51, %c0_52] : memref<1x32xf32, #tpu.memory_space<vmem>>, vector<1x32xf32>
    %63 = vector.broadcast %62 : vector<1x32xf32> to vector<8x32xf32>
    %64 = arith.addf %61, %63 : vector<8x32xf32>
    %cst_53 = arith.constant 0.000000e+00 : f32
    %65 = vector.broadcast %cst_53 : f32 to vector<8x32xf32>
    %66 = arith.maximumf %64, %65 : vector<8x32xf32>
    %c0_54 = arith.constant 0 : index
    %c0_55 = arith.constant 0 : index
    %67 = vector.load %arg18[%c0_54, %c0_55] : memref<32x1xf32, #tpu.memory_space<vmem>>, vector<32x1xf32>
    %cst_56 = arith.constant dense<0.000000e+00> : vector<8x1xf32>
    %68 = tpu.matmul %66, %67, %cst_56 {dimension_numbers = #tpu.dot_dimension_numbers<[1], [0], [0], [1], [0, 0, 1, 1], [], []>} : vector<8x32xf32>, vector<32x1xf32>, vector<8x1xf32> -> vector<8x1xf32>
    %c0_57 = arith.constant 0 : index
    %c0_58 = arith.constant 0 : index
    %69 = vector.load %arg19[%c0_57, %c0_58] : memref<1x1xf32, #tpu.memory_space<vmem>>, vector<1x1xf32>
    %70 = vector.broadcast %69 : vector<1x1xf32> to vector<8x1xf32>
    %71 = arith.addf %68, %70 : vector<8x1xf32>
    %c0_59 = arith.constant 0 : index
    %c0_60 = arith.constant 0 : index
    %72 = vector.load %arg20[%c0_59, %c0_60] : memref<8x1xf32, #tpu.memory_space<vmem>>, vector<8x1xf32>
    tpu.vector_store %arg20[%c0_59, %c0_60], %71 {strides = array<i32>} : memref<8x1xf32, #tpu.memory_space<vmem>>, vector<8x1xf32>,
    return
  }
  func.func @transform_0(%arg0: i32) -> (i32, i32) {
    %c0_i32 = arith.constant 0 : i32
    %c0_i32_0 = arith.constant 0 : i32
    return %arg0, %c0_i32 : i32, i32
  }
  func.func @transform_1(%arg0: i32) -> (i32, i32) {
    %c0_i32 = arith.constant 0 : i32
    %c0_i32_0 = arith.constant 0 : i32
    return %arg0, %c0_i32 : i32, i32
  }
  func.func @transform_2(%arg0: i32) -> (i32, i32) {
    %c0_i32 = arith.constant 0 : i32
    %c0_i32_0 = arith.constant 0 : i32
    return %arg0, %c0_i32 : i32, i32
  }
  func.func @transform_3(%arg0: i32) -> (i32, i32) {
    %c0_i32 = arith.constant 0 : i32
    %c0_i32_0 = arith.constant 0 : i32
    return %arg0, %c0_i32 : i32, i32
  }
  func.func @transform_4(%arg0: i32) -> (i32, i32) {
    %c0_i32 = arith.constant 0 : i32
    %c0_i32_0 = arith.constant 0 : i32
    return %arg0, %c0_i32 : i32, i32
  }
  func.func @transform_5(%arg0: i32) -> (i32, i32) {
    %c0_i32 = arith.constant 0 : i32
    %c0_i32_0 = arith.constant 0 : i32
    %c0_i32_1 = arith.constant 0 : i32
    return %c0_i32, %c0_i32_0 : i32, i32
  }
  func.func @transform_6(%arg0: i32) -> (i32, i32) {
    %c0_i32 = arith.constant 0 : i32
    %c0_i32_0 = arith.constant 0 : i32
    %c0_i32_1 = arith.constant 0 : i32
    return %c0_i32, %c0_i32_0 : i32, i32
  }
  func.func @transform_7(%arg0: i32) -> (i32, i32) {
    %c0_i32 = arith.constant 0 : i32
    %c0_i32_0 = arith.constant 0 : i32
    %c0_i32_1 = arith.constant 0 : i32
    return %c0_i32, %c0_i32_0 : i32, i32
  }
  func.func @transform_8(%arg0: i32) -> (i32, i32) {
    %c0_i32 = arith.constant 0 : i32
    %c0_i32_0 = arith.constant 0 : i32
    %c0_i32_1 = arith.constant 0 : i32
    return %c0_i32, %c0_i32_0 : i32, i32
  }
  func.func @transform_9(%arg0: i32) -> (i32, i32) {
    %c0_i32 = arith.constant 0 : i32
    %c0_i32_0 = arith.constant 0 : i32
    %c0_i32_1 = arith.constant 0 : i32
    return %c0_i32, %c0_i32_0 : i32, i32
  }
  func.func @transform_10(%arg0: i32) -> (i32, i32) {
    %c0_i32 = arith.constant 0 : i32
    %c0_i32_0 = arith.constant 0 : i32
    %c0_i32_1 = arith.constant 0 : i32
    return %c0_i32, %c0_i32_0 : i32, i32
  }
  func.func @transform_11(%arg0: i32) -> (i32, i32) {
    %c0_i32 = arith.constant 0 : i32
    %c0_i32_0 = arith.constant 0 : i32
    %c0_i32_1 = arith.constant 0 : i32
    return %c0_i32, %c0_i32_0 : i32, i32
  }
  func.func @transform_12(%arg0: i32) -> (i32, i32) {
    %c0_i32 = arith.constant 0 : i32
    %c0_i32_0 = arith.constant 0 : i32
    %c0_i32_1 = arith.constant 0 : i32
    return %c0_i32, %c0_i32_0 : i32, i32
  }
  func.func @transform_13(%arg0: i32) -> (i32, i32) {
    %c0_i32 = arith.constant 0 : i32
    %c0_i32_0 = arith.constant 0 : i32
    %c0_i32_1 = arith.constant 0 : i32
    return %c0_i32, %c0_i32_0 : i32, i32
  }
  func.func @transform_14(%arg0: i32) -> (i32, i32) {
    %c0_i32 = arith.constant 0 : i32
    %c0_i32_0 = arith.constant 0 : i32
    %c0_i32_1 = arith.constant 0 : i32
    return %c0_i32, %c0_i32_0 : i32, i32
  }
  func.func @transform_15(%arg0: i32) -> (i32, i32) {
    %c0_i32 = arith.constant 0 : i32
    %c0_i32_0 = arith.constant 0 : i32
    %c0_i32_1 = arith.constant 0 : i32
    return %c0_i32, %c0_i32_0 : i32, i32
  }
  func.func @transform_16(%arg0: i32) -> (i32, i32) {
    %c0_i32 = arith.constant 0 : i32
    %c0_i32_0 = arith.constant 0 : i32
    %c0_i32_1 = arith.constant 0 : i32
    return %c0_i32, %c0_i32_0 : i32, i32
  }
  func.func @transform_17(%arg0: i32) -> (i32, i32) {
    %c0_i32 = arith.constant 0 : i32
    %c0_i32_0 = arith.constant 0 : i32
    %c0_i32_1 = arith.constant 0 : i32
    return %c0_i32, %c0_i32_0 : i32, i32
  }
  func.func @transform_18(%arg0: i32) -> (i32, i32) {
    %c0_i32 = arith.constant 0 : i32
    %c0_i32_0 = arith.constant 0 : i32
    %c0_i32_1 = arith.constant 0 : i32
    return %c0_i32, %c0_i32_0 : i32, i32
  }
  func.func @transform_19(%arg0: i32) -> (i32, i32) {
    %c0_i32 = arith.constant 0 : i32
    %c0_i32_0 = arith.constant 0 : i32
    return %arg0, %c0_i32 : i32, i32
  }
}

</mosaic_0001>

<bundles_post_ra>
// kernel: tpu_custom_call.1
= control target key start
LH: loop header
LB: loop body
LE: loop exit
PB: predicated region body
PF: predicated region fallthrough
CT: control target
= control target key end

     0   :  { %vm202_vm0 = vcmask 1044480   ;;  %v1393_v0 = vmov 0.0   ;;  %vm1394_vm1 = vmmov 0   ;;  %vm198_vm2 = vcmask 39936   ;;  %s1762_s7 = inlined_call_operand.vmem [shape: f32[5,64], index: 7, kind: input, shape index: {}]   ;;  %s1763_s1 = inlined_call_operand.vmem [shape: f32[8,5], index: 1, kind: input, shape index: {}]   ;;  %s1764_s5 = inlined_call_operand.vmem [shape: f32[16,64], index: 5, kind: input, shape index: {}]   ;;  %s1765_s13 = inlined_call_operand.vmem [shape: f32[320,32], index: 13, kind: input, shape index: {}]   ;;  %s1766_s0 = inlined_call_operand.vmem [shape: f32[8,16], index: 0, kind: input, shape index: {}]   ;;  %s1767_s8 = inlined_call_operand.vmem [shape: f32[1,64], index: 8, kind: input, shape index: {}]   ;;  %s1768_s6 = inlined_call_operand.vmem [shape: f32[1,64], index: 6, kind: input, shape index: {}]   ;;  %s1769_s9 = inlined_call_operand.vmem [shape: f32[3,64], index: 9, kind: input, shape index: {}]   ;;  %s1770_s2 = inlined_call_operand.vmem [shape: f32[8,3], index: 2, kind: input, shape index: {}]   ;;  %s1771_s11 = inlined_call_operand.vmem [shape: f32[6,64], index: 11, kind: input, shape index: {}]   ;;  %s1772_s3 = inlined_call_operand.vmem [shape: f32[8,6], index: 3, kind: input, shape index: {}]   ;;  %s1773_s10 = inlined_call_operand.vmem [shape: f32[1,64], index: 10, kind: input, shape index: {}]   ;;  %s1774_s12 = inlined_call_operand.vmem [shape: f32[1,64], index: 12, kind: input, shape index: {}]   ;;  %s1775_s4 = inlined_call_operand.vmem [shape: f32[8,6], index: 4, kind: input, shape index: {}]   ;;  %s1776_s15 = inlined_call_operand.vmem [shape: f32[32,32], index: 15, kind: input, shape index: {}]   ;;  %s1777_s14 = inlined_call_operand.vmem [shape: f32[1,32], index: 14, kind: input, shape index: {}]   ;;  %s1778_s17 = inlined_call_operand.vmem [shape: f32[32,1], index: 17, kind: input, shape index: {}]   ;;  %s1779_s18 = inlined_call_operand.<no memory space> [shape: f32[1,1], index: 18, kind: input, shape index: {}]   ;;  %s1780_s16 = inlined_call_operand.vmem [shape: f32[1,32], index: 16, kind: input, shape index: {}]   ;;  %s1781_s19 = inlined_call_operand.vmem [shape: f32[8,1], index: 19, kind: output, shape index: {}]  }
   0x1   :  { %1784 = sst [smem:[#allocation3_spill]] %s1762_s7  ;;  %1178 = vmatprep.subr.mxu1 %v1393_v0  ;;  %1180 = vmatprep.mubr.msk.f32.mxu1 %vm1394_vm1, %v1393_v0  ;;  %v1395_v4 = vmov 0.0|0.0   ;;  %v104_v14 = vld [vmem:[%s1766_s0] sm:$0xff]  ;;  %vm114_vm3 = vcmask 130048   ;;  %vm277_vm4 = vcmask 523264   ;;  %vm437_vm5 = vcmask 1042432  }
   0x2   :  { %1785 = sst [smem:[#allocation4_spill]] %s1763_s1  ;;  %s1788_s20 = sld [smem:[#allocation3_spill]]  ;;  %1315 = vmatprep.subr.bf16.mxu0 %v1395_v4  ;;  %1175 = vmatprep.mubr.msk.f32.mxu0 %vm1394_vm1, %v1393_v0  ;;  %v1084_v32 = vld [vmem:[%s1767_s8] ss:$0 sm:$0xff]  ;;  %vm433_vm6 = vcmask 23552   ;;  %vm599_vm7 = vcmask 1045504  }
   0x3   :  { %1786 = sst [smem:[#allocation5_spill]] %s1764_s5  ;;  %s1789_s22 = sld [smem:[#allocation4_spill]]  ;;  %v1082_v37 = vld [vmem:[%s1768_s6] ss:$0 sm:$0xff]  ;;  %vm595_vm8 = vcmask 48128   ;;  %vm917_vm9 = vcmask 261120  }
   0x4   :  { %1787 = sst [smem:[#allocation6_spill]] %s1765_s13  ;;  %s1790_s24 = sld [smem:[#allocation5_spill]]  ;;  %v425_v38 = vld [vmem:[%s1769_s9] sm:$0x7]  ;;  %vm1076_vm10 = vcmask 7168  }
   0x5   :  { %s1791_s28 = sld [smem:[#allocation6_spill]]  ;;  %v424_v43 = vld [vmem:[%s1770_s2] sm:$0xff] }
   0x6   :  { %v1604_v45 = vld [vmem:[%s1771_s11] sm:$0x3f] }
   0x7   :  { %v586_v52 = vld [vmem:[%s1772_s3] sm:$0xff] }
   0x8   :  { %v190_v1 = vld [vmem:[%s1788_s20] sm:$0x1f] }
   0x9   :  { %v189_v2 = vld [vmem:[%s1789_s22] sm:$0xff]  ;;  %1179 = vmatpush3.msk.msra.mxu1 %vm202_vm0, %v190_v1 }
   0xa   :  { %v105_v3 = vld [vmem:[%s1790_s24] sm:$0xff]  ;;  %v106_v5 = vld [vmem:[%s1790_s24 + $0x8] sm:$0xff]  ;;  %1181 = vmatmul.mubr.msk.f32.vlgmr.msra.gmra.mrb[0].mxu1 %vm198_vm2, %v189_v2  ;;  %1318 = vmatprep.subr.bf16.mxu1 %v1395_v4 }
   0xb   :  { %v72_v6 = vld [vmem:[%s1791_s28 + $0x40] sm:$0xff]  ;;  %v1316_v7 = vpack.c.bf16 %v106_v5, %v105_v3  ;;  %v73_v8 = vld [vmem:[%s1791_s28 + $0x48] sm:$0xff]  ;;  %v74_v9 = vld [vmem:[%s1791_s28 + $0x50] sm:$0xff]  ;;  %1199 = vmatprep.mubr.msk.f32.mxu1 %vm1394_vm1, %v1393_v0 }
   0xc   :  { %v75_v10 = vld [vmem:[%s1791_s28 + $0x58] sm:$0xff]  ;;  %v1319_v11 = vpack.c.bf16 %v73_v8, %v72_v6  ;;  %v64_v12 = vld [vmem:[%s1791_s28] sm:$0xff]  ;;  %v65_v13 = vld [vmem:[%s1791_s28 + $0x8] sm:$0xff] }
   0xd   :  { %1317 = vmatpush3.bf16.msra.mxu0 %v1316_v7  ;;  %v1331_v15 = vpack.c.bf16 %v65_v13, %v64_v12  ;;  %v1322_v16 = vpack.c.bf16 %v75_v10, %v74_v9  ;;  %v66_v17 = vld [vmem:[%s1791_s28 + $0x10] sm:$0xff]  ;;  %v67_v18 = vld [vmem:[%s1791_s28 + $0x18] sm:$0xff]  ;;  %v76_v19 = vld [vmem:[%s1791_s28 + $0x60] sm:$0xff] }
   0xe   :  { %1320 = vmatpush3.bf16.msra.mxu1 %v1319_v11  ;;  %1330 = vmatprep.subr.bf16.mxu0 %v1395_v4  ;;  %v77_v20 = vld [vmem:[%s1791_s28 + $0x68] sm:$0xff]  ;;  %v1334_v21 = vpack.c.bf16 %v67_v18, %v66_v17  ;;  %v78_v23 = vld [vmem:[%s1791_s28 + $0x70] sm:$0xff]  ;;  %v79_v24 = vld [vmem:[%s1791_s28 + $0x78] sm:$0xff] }
   0xf   :  { %1321 = vmatprep.subr.bf16.mxu1 %v1395_v4  ;;  %v1325_v22 = vpack.c.bf16 %v77_v20, %v76_v19  ;;  %v68_v25 = vld [vmem:[%s1791_s28 + $0x20] sm:$0xff]  ;;  %v1328_v26 = vpack.c.bf16 %v79_v24, %v78_v23  ;;  %v69_v27 = vld [vmem:[%s1791_s28 + $0x28] sm:$0xff]  ;;  %v70_v29 = vld [vmem:[%s1791_s28 + $0x30] sm:$0xff] }
  0x10   :  { %1176 = vmatmul.mubr.msk.f32.vlgmr.msra.gmra.mrb[0].mxu0 %vm114_vm3, %v104_v14  ;;  %v1337_v28 = vpack.c.bf16 %v69_v27, %v68_v25  ;;  %v71_v30 = vld [vmem:[%s1791_s28 + $0x38] sm:$0xff]  ;;  %v80_v39 = vld [vmem:[%s1791_s28 + $0x80] sm:$0xff]  ;;  %v81_v40 = vld [vmem:[%s1791_s28 + $0x88] sm:$0xff] }
  0x11   :  { %1332 = vmatpush3.bf16.msra.mxu0 %v1331_v15  ;;  %1218 = vmatprep.mubr.msk.f32.mxu0 %vm1394_vm1, %v1393_v0  ;;  %v1340_v31 = vpack.c.bf16 %v71_v30, %v70_v29  ;;  %v1343_v46 = vpack.c.bf16 %v81_v40, %v80_v39  ;;  %v88_v47 = vld [vmem:[%s1791_s28 + $0xc0] sm:$0xff]  ;;  %v89_v48 = vld [vmem:[%s1791_s28 + $0xc8] sm:$0xff]  ;;  %v82_v50 = vld [vmem:[%s1791_s28 + $0x90] sm:$0xff] }
  0x12   :  { %1323 = vmatpush3.bf16.msra.mxu1 %v1322_v16  ;;  %1333 = vmatprep.subr.bf16.mxu0 %v1395_v4  ;;  %v83_v51 = vld [vmem:[%s1791_s28 + $0x98] sm:$0xff]  ;;  %v1355_v53 = vpack.c.bf16 %v89_v48, %v88_v47  ;;  %v84_v55 = vld [vmem:[%s1791_s28 + $0xa0] sm:$0xff]  ;;  %v85_v56 = vld [vmem:[%s1791_s28 + $0xa8] sm:$0xff] }
  0x13   :  { %1324 = vmatprep.subr.bf16.mxu1 %v1395_v4  ;;  %v1346_v54 = vpack.c.bf16 %v83_v51, %v82_v50  ;;  %v90_v57 = vld [vmem:[%s1791_s28 + $0xd0] sm:$0xff]  ;;  %v1349_v58 = vpack.c.bf16 %v85_v56, %v84_v55  ;;  %v91_v59 = vld [vmem:[%s1791_s28 + $0xd8] sm:$0xff]  ;;  %v92_v63 = vld [vmem:[%s1791_s28 + $0xe0] sm:$0xff] }
  0x14   :  { %v1358_v60 = vpack.c.bf16 %v91_v59, %v90_v57  ;;  %v86_v61 = vld [vmem:[%s1791_s28 + $0xb0] sm:$0xff]  ;;  %v87_v62 = vld [vmem:[%s1791_s28 + $0xb8] sm:$0xff]  ;;  %v93_v2 = vld [vmem:[%s1791_s28 + $0xe8] sm:$0xff] }
  0x15   :  { %1335 = vmatpush3.bf16.msra.mxu0 %v1334_v21  ;;  %v1352_v1 = vpack.c.bf16 %v87_v62, %v86_v61  ;;  %v1361_v3 = vpack.c.bf16 %v93_v2, %v92_v63  ;;  %v94_v5 = vld [vmem:[%s1791_s28 + $0xf0] sm:$0xff]  ;;  %v95_v6 = vld [vmem:[%s1791_s28 + $0xf8] sm:$0xff]  ;;  %v1089_v10 = vld [vmem:[%s1773_s10] ss:$0 sm:$0xff] }
  0x16   :  { %1326 = vmatpush3.bf16.msra.mxu1 %v1325_v22  ;;  %1336 = vmatprep.subr.bf16.mxu0 %v1395_v4  ;;  %v1364_v7 = vpack.c.bf16 %v95_v6, %v94_v5  ;;  %v1093_v16 = vld [vmem:[%s1774_s12] ss:$0 sm:$0xff]  ;;  %v97_v20 = vld [vmem:[%s1791_s28 + $0x108] sm:$0xff]  ;;  %v98_v27 = vld [vmem:[%s1791_s28 + $0x110] sm:$0xff] }
  0x17   :  { %1327 = vmatprep.subr.bf16.mxu1 %v1395_v4  ;;  %v96_v19 = vld [vmem:[%s1791_s28 + $0x100] sm:$0xff]  ;;  %v907_v47 = vld [vmem:[%s1776_s15 + $0x8] sm:$0xff]  ;;  %v909_v50 = vld [vmem:[%s1776_s15 + $0x18] sm:$0xff] }
  0x18   :  { %v748_v24 = vld [vmem:[%s1775_s4] sm:$0xff]  ;;  %v1367_v25 = vpack.c.bf16 %v97_v20, %v96_v19  ;;  %v993_v57 = vld [vmem:[%s1778_s17 + $0x8] sm:$0xff]  ;;  %v994_v61 = vld [vmem:[%s1778_s17 + $0x10] sm:$0xff] }
  0x19   :  { %1338 = vmatpush3.bf16.msra.mxu0 %v1337_v28  ;;  %v99_v28 = vld [vmem:[%s1791_s28 + $0x118] sm:$0xff]  ;;  %v100_v30 = vld [vmem:[%s1791_s28 + $0x120] sm:$0xff] }
  0x1a   :  { %1329 = vmatpush3.bf16.msra.mxu1 %v1328_v26  ;;  %1339 = vmatprep.subr.bf16.mxu0 %v1395_v4  ;;  %v1370_v29 = vpack.c.bf16 %v99_v28, %v98_v27  ;;  %v992_v56 = vld [vmem:[%s1778_s17] sm:$0xff]  ;;  %v995_v62 = vld [vmem:[%s1778_s17 + $0x18] sm:$0xff] }
  0x1b   :  { %1221 = vmatprep.subr.mxu1 %v1393_v0  ;;  %v1385_v59 = vpack.c.bf16 %v993_v57, %v992_v56  ;;  %v1388_v63 = vpack.c.bf16 %v995_v62, %v994_v61 }
  0x1d   :  { %1341 = vmatpush3.bf16.msra.mxu0 %v1340_v31  ;;  %v101_v31 = vld [vmem:[%s1791_s28 + $0x128] sm:$0xff] }
  0x1e   :  { %1342 = vmatprep.subr.bf16.mxu0 %v1395_v4 }
  0xdd   :  { %v272_v33 = vpop.f32.mrb[0].mxu1 }
  0xde   :  { %v273_v34 = vadd.f32 %v1084_v32, %v272_v33  ;;  %v1182_v35 = vpop.f32.mrb[1].mxu1  ;;  %v1373_v32 = vpack.c.bf16 %v101_v31, %v100_v30  ;;  %v102_v33 = vld [vmem:[%s1791_s28 + $0x130] sm:$0xff] }
  0xe0   :  { %v276_v36 = vmax.f32 %v273_v34, 0.0  ;;  %v103_v34 = vld [vmem:[%s1791_s28 + $0x138] sm:$0xff] }
  0xe1   :  { %v1376_v35 = vpack.c.bf16 %v103_v34, %v102_v33 }
  0xe2   :  { %1200 = vmatmul.mubr.msk.f32.vlgmr.msra.gmra.mrb[2].mxu1 %vm277_vm4, %v276_v36 }
  0xe3   :  { %v184_v41 = vpop.f32.mrb[0].mxu0  ;;  %1222 = vmatpush3.msk.msra.mxu1 %vm437_vm5, %v425_v38  ;;  %1223 = vmatprep.mubr.msk.f32.mxu1 %vm1394_vm1, %v1393_v0 }
  0xe4   :  { %v185_v42 = vadd.f32 %v1082_v37, %v184_v41  ;;  %v1177_v44 = vpop.f32.mrb[1].mxu0  ;;  %1245 = vmatprep.subr.mxu1 %v1393_v0 }
  0xe6   :  { %v188_v49 = vmax.f32 %v185_v42, 0.0  ;;  %1224 = vmatmul.mubr.msk.f32.vlgmr.msra.gmra.mrb[4].mxu1 %vm433_vm6, %v424_v43 }
  0xe7   :  { %1246 = vmatpush3.msk.msra.mxu1 %vm599_vm7, %v1604_v45  ;;  %1247 = vmatprep.mubr.msk.f32.mxu1 %vm1394_vm1, %v1393_v0 }
  0xe8   :  { %1219 = vmatmul.mubr.msk.f32.vlgmr.msra.gmra.mrb[2].mxu0 %vm277_vm4, %v188_v49  ;;  %1354 = vmatprep.subr.bf16.mxu1 %v1395_v4  ;;  %v908_v49 = vld [vmem:[%s1776_s15 + $0x10] sm:$0xff] }
  0xe9   :  { %1344 = vmatpush3.bf16.msra.mxu0 %v1343_v46  ;;  %1242 = vmatprep.mubr.msk.f32.mxu0 %vm1394_vm1, %v1393_v0  ;;  %v906_v46 = vld [vmem:[%s1776_s15] sm:$0xff]  ;;  %v1382_v51 = vpack.c.bf16 %v909_v50, %v908_v49 }
  0xea   :  { %1345 = vmatprep.subr.bf16.mxu0 %v1395_v4  ;;  %1248 = vmatmul.mubr.msk.f32.vlgmr.msra.gmra.mrb[6].mxu1 %vm595_vm8, %v586_v52  ;;  %v1379_v48 = vpack.c.bf16 %v907_v47, %v906_v46 }
  0xeb   :  { %1356 = vmatpush3.bf16.msra.mxu1 %v1355_v53  ;;  %1266 = vmatprep.mubr.msk.f32.mxu1 %vm1394_vm1, %v1393_v0  ;;  %v1100_v53 = vld [vmem:[%s1777_s14] ss:$0 sm:$0xff] }
  0xec   :  { %1357 = vmatprep.subr.bf16.mxu1 %v1395_v4 }
  0xed   :  { %1347 = vmatpush3.bf16.msra.mxu0 %v1346_v54 }
  0xee   :  { %1348 = vmatprep.subr.bf16.mxu0 %v1395_v4 }
  0xef   :  { %1359 = vmatpush3.bf16.msra.mxu1 %v1358_v60 }
  0xf0   :  { %1360 = vmatprep.subr.bf16.mxu1 %v1395_v4 }
  0xf1   :  { %1350 = vmatpush3.bf16.msra.mxu0 %v1349_v58 }
  0xf2   :  { %1351 = vmatprep.subr.bf16.mxu0 %v1395_v4 }
  0xf3   :  { %1362 = vmatpush3.bf16.msra.mxu1 %v1361_v3 }
  0xf4   :  { %1363 = vmatprep.subr.bf16.mxu1 %v1395_v4 }
  0xf5   :  { %1353 = vmatpush3.bf16.msra.mxu0 %v1352_v1  ;;  %v24_v1 = vstv %s1779_s18 }
  0xf6   :  { %1269 = vmatprep.subr.mxu0 %v1393_v0  ;;  %25 = vst [vmem:[#allocation2] sm:$0x1] %v24_v1 }
  0xf7   :  { %1365 = vmatpush3.bf16.msra.mxu1 %v1364_v7 }
  0xf8   :  { %1378 = vmatprep.subr.bf16.mxu1 %v1395_v4 }
  0xfd   :  { %v1103_v6 = vld [vmem:[#allocation2] ss:$0 sm:$0xff] }
 0x1b5   :  { %v347_v8 = vpop.f32.mrb[2].mxu1 }
 0x1b6   :  { %v1201_v9 = vpop.f32.mrb[3].mxu1 }
 0x1b9   :  { %v507_v11 = vpop.f32.mrb[4].mxu1 }
 0x1ba   :  { %v508_v13 = vadd.f32 %v1089_v10, %v507_v11  ;;  %v1225_v14 = vpop.f32.mrb[5].mxu1 }
 0x1bb   :  { %v420_v12 = vpop.f32.mrb[2].mxu0 }
 0x1bc   :  { %v421_v15 = vadd.f32 %v420_v12, %v347_v8  ;;  %v1220_v17 = vpop.f32.mrb[3].mxu0  ;;  %v511_v18 = vmax.f32 %v508_v13, 0.0 }
 0x1bd   :  { %v669_v21 = vpop.f32.mrb[6].mxu1 }
 0x1be   :  { %v670_v22 = vadd.f32 %v1093_v16, %v669_v21  ;;  %1243 = vmatmul.mubr.msk.f32.vlgmr.msra.gmra.mrb[4].mxu0 %vm277_vm4, %v511_v18  ;;  %v1249_v23 = vpop.f32.mrb[7].mxu1 }
 0x1bf   :  { %1270 = vmatpush3.msk.msra.mxu0 %vm599_vm7, %v1604_v45  ;;  %1271 = vmatprep.mubr.msk.f32.mxu0 %vm1394_vm1, %v1393_v0 }
 0x1c0   :  { %v673_v26 = vmax.f32 %v670_v22, 0.0  ;;  %1366 = vmatprep.subr.bf16.mxu0 %v1395_v4 }
 0x1c2   :  { %1267 = vmatmul.mubr.msk.f32.vlgmr.msra.gmra.mrb[8].mxu1 %vm277_vm4, %v673_v26  ;;  %1272 = vmatmul.mubr.msk.f32.vlgmr.msra.gmra.mrb[6].mxu0 %vm595_vm8, %v748_v24 }
 0x1c3   :  { %1368 = vmatpush3.bf16.msra.mxu0 %v1367_v25  ;;  %1290 = vmatprep.mubr.msk.f32.mxu0 %vm1394_vm1, %v1393_v0 }
 0x1c4   :  { %1369 = vmatprep.subr.bf16.mxu0 %v1395_v4  ;;  %1301 = vmatprep.mubr.msk.f32.mxu1 %vm1394_vm1, %v1393_v0 }
 0x1c5   :  { %1380 = vmatpush3.bf16.msra.mxu1 %v1379_v48 }
 0x1c6   :  { %1381 = vmatprep.subr.bf16.mxu1 %v1395_v4 }
 0x1c7   :  { %1371 = vmatpush3.bf16.msra.mxu0 %v1370_v29 }
 0x1c8   :  { %1372 = vmatprep.subr.bf16.mxu0 %v1395_v4 }
 0x1c9   :  { %1383 = vmatpush3.bf16.msra.mxu1 %v1382_v51 }
 0x1ca   :  { %1384 = vmatprep.subr.bf16.mxu1 %v1395_v4 }
 0x1cb   :  { %1374 = vmatpush3.bf16.msra.mxu0 %v1373_v32 }
 0x1cc   :  { %1375 = vmatprep.subr.bf16.mxu0 %v1395_v4 }
 0x1cf   :  { %1377 = vmatpush3.bf16.msra.mxu0 %v1376_v35 }
 0x291   :  { %v581_v36 = vpop.f32.mrb[4].mxu0 }
 0x292   :  { %v585_v37 = vadd.f32 %v581_v36, %v421_v15  ;;  %v1244_v38 = vpop.f32.mrb[5].mxu0 }
 0x295   :  { %v743_v39 = vpop.f32.mrb[8].mxu1  ;;  %v818_v40 = vpop.f32.mrb[6].mxu0 }
 0x296   :  { %v747_v41 = vadd.f32 %v743_v39, %v585_v37  ;;  %v819_v42 = vadd.f32 %v1093_v16, %v818_v40  ;;  %v1273_v43 = vpop.f32.mrb[7].mxu0  ;;  %v1268_v44 = vpop.f32.mrb[9].mxu1 }
 0x298   :  { %v822_v45 = vmax.f32 %v819_v42, 0.0 }
 0x29a   :  { %1291 = vmatmul.mubr.msk.f32.vlgmr.msra.gmra.mrb[8].mxu0 %vm277_vm4, %v822_v45 }
 0x36d   :  { %v892_v52 = vpop.f32.mrb[8].mxu0 }
 0x36e   :  { %v896_v54 = vadd.f32 %v892_v52, %v747_v41  ;;  %v1292_v55 = vpop.f32.mrb[9].mxu0 }
 0x370   :  { %v904_v58 = vadd.f32 %v1100_v53, %v896_v54 }
 0x372   :  { %v905_v60 = vmax.f32 %v904_v58, 0.0 }
 0x374   :  { %1302 = vmatmul.mubr.msk.f32.vlgmr.msra.gmra.mrb[10].mxu1 %vm917_vm9, %v905_v60 }
 0x375   :  { %1386 = vmatpush3.bf16.msra.mxu1 %v1385_v59  ;;  %1312 = vmatprep.mubr.msk.f32.mxu1 %vm1394_vm1, %v1393_v0  ;;  %v1101_v0 = vld [vmem:[%s1780_s16] ss:$0 sm:$0xff] }
 0x376   :  { %1387 = vmatprep.subr.bf16.mxu1 %v1395_v4 }
 0x379   :  { %1389 = vmatpush3.bf16.msra.mxu1 %v1388_v63 }
 0x447   :  { %v987_v4 = vpop.f32.mrb[10].mxu1 }
 0x448   :  { %v988_v2 = vadd.f32 %v1101_v0, %v987_v4  ;;  %v1303_v3 = vpop.f32.mrb[11].mxu1 }
 0x44a   :  { %v991_v5 = vmax.f32 %v988_v2, 0.0 }
 0x44c   :  { %1313 = vmatmul.mubr.msk.f32.vlgmr.msra.gmra.mrb[12].mxu1 %vm917_vm9, %v991_v5 }
 0x51f   :  { %v1072_v7 = vpop.f32.mrb[12].mxu1 }
 0x520   :  { %v1073_v8 = vadd.f32 %v1103_v6, %v1072_v7  ;;  %v1314_v9 = vpop.f32.mrb[13].mxu1 }
 0x522   :  { %1077 = vst.msk [vmem:[%s1781_s19] sm:$0xff] %vm1076_vm10, %v1073_v8 }

</bundles_post_ra>
